<compile_context>
chip_gen: v5e
topology: v5e:2x2
jax: 0.10.0
libtpu: 0.0.40
codegen_flags: <defaults>
</compile_context>

<pallas_src>
import math

import jax
import jax.numpy as jnp
from jax.experimental import pallas as pl
from jax.experimental.pallas import tpu as pltpu


def _round_up(x, m):
    return ((x + m - 1) // m) * m


# -----------------------------------------------------------------------------
# Kernel
# -----------------------------------------------------------------------------
def _adapter_kernel(x_ref, wd_ref, bd_ref, wu_ref, bu_ref, o_ref):
    # x_ref : (TM, D)      input rows (also the residual source)
    # wd_ref: (D, A_pad)   down-projection weight (transposed, zero-padded cols)
    # bd_ref: (1, A_pad)   down-projection bias, f32 (zero-padded)
    # wu_ref: (A_pad, D)   up-projection weight (transposed, zero-padded rows)
    # bu_ref: (1, D)       up-projection bias, f32
    # o_ref : (TM, D)
    #
    # The first matmul consumes x in the weight dtype (no-op cast when both
    # are f32); the f32 residual view of x is only materialised in the
    # epilogue so no (TM, D) f32 temporary stays live across both matmuls.
    down = jnp.dot(x_ref[...].astype(wd_ref.dtype), wd_ref[...],
                   preferred_element_type=jnp.float32)
    down = down + bd_ref[...]

    # Exact (erf-based) GELU, matching torch.nn.GELU() default.
    # TODO(synk): switch to tanh-approx GELU (EUP) only if a bundle dump shows
    # VALU as the saturated slot once the memory side is optimized.
    act = 0.5 * down * (1.0 + jax.lax.erf(down * (1.0 / math.sqrt(2.0))))

    up = jnp.dot(act.astype(wu_ref.dtype), wu_ref[...],
                 preferred_element_type=jnp.float32)
    up = up + bu_ref[...]

    o_ref[...] = (up + x_ref[...].astype(jnp.float32)).astype(o_ref.dtype)


# -----------------------------------------------------------------------------
# One-time parameter re-layout (hoisted out of the per-call path)
# -----------------------------------------------------------------------------
def prepare_adapter_params(w_down, b_down, w_up, b_up, *, param_dtype=None):
    """Pre-transpose / zero-pad the PyTorch-layout adapter parameters once.

    w_down: (A, D)  nn.Linear weight layout (out, in)
    b_down: (A,)
    w_up:   (D, A)
    b_up:   (D,)
    param_dtype: optional matmul dtype for the weights (e.g. jnp.bfloat16 on
      v5e as an accuracy/speed trade-off); the kernel still accumulates in f32.

    Padding the bottleneck dim to a multiple of 128 lanes is exact:
    gelu(0 + 0) = 0 and the padded up-projection rows are zero.
    """
    w_down = jnp.asarray(w_down)
    A, D = w_down.shape
    A_pad = _round_up(A, 128)
    dt = jnp.dtype(param_dtype) if param_dtype is not None else w_down.dtype
    wd = jnp.zeros((D, A_pad), dtype=dt).at[:, :A].set(w_down.T.astype(dt))
    bd = jnp.zeros((1, A_pad), dtype=jnp.float32).at[:, :A].set(
        jnp.asarray(b_down).astype(jnp.float32))
    wu = jnp.zeros((A_pad, D), dtype=dt).at[:A, :].set(
        jnp.asarray(w_up).T.astype(dt))
    bu = jnp.asarray(b_up).reshape(1, D).astype(jnp.float32)
    return wd, bd, wu, bu


# -----------------------------------------------------------------------------
# Single-buffering support probe for the VMEM-resident weights
# -----------------------------------------------------------------------------
_BUFFERED_SUPPORT = None


def _weights_pipeline_mode():
    """Return pl.Buffered(1) if supported by the installed Pallas, else None."""
    global _BUFFERED_SUPPORT
    if _BUFFERED_SUPPORT is None:
        try:
            def _copy(x_ref, o_ref):
                o_ref[...] = x_ref[...]

            probe = pl.pallas_call(
                _copy,
                out_shape=jax.ShapeDtypeStruct((8, 128), jnp.float32),
                grid=(1,),
                in_specs=[pl.BlockSpec((8, 128), lambda i: (0, 0),
                                       pipeline_mode=pl.Buffered(1))],
                out_specs=pl.BlockSpec((8, 128), lambda i: (0, 0)),
            )(jnp.zeros((8, 128), jnp.float32))
            jax.block_until_ready(probe)
            _BUFFERED_SUPPORT = True
        except Exception:  # fall back to default double-buffering
            _BUFFERED_SUPPORT = False
    return pl.Buffered(1) if _BUFFERED_SUPPORT else None


# -----------------------------------------------------------------------------
# Tile selection (VMEM-budget aware, conservative enough for v7x 64 MiB/TC)
# -----------------------------------------------------------------------------
_VMEM_WORKING_SET_BUDGET = 48 * 1024 * 1024


def _select_row_tile(M, D, A_pad, x_itemsize, w_itemsize, block_m):
    tm = min(block_m, _round_up(max(M, 1), 8))
    tm = max(8, _round_up(tm, 8))

    def working_set(tm_):
        io = 2 * 2 * tm_ * D * x_itemsize                        # x + out, double-buffered
        weights = 2 * A_pad * D * w_itemsize + (A_pad + D) * 4   # resident weights + biases
        temps = 2 * tm_ * A_pad * 4 + 2 * tm_ * D * 4            # f32 intermediates (rough)
        return io + weights + temps

    while tm > 8 and working_set(tm) > _VMEM_WORKING_SET_BUDGET:
        tm = max(8, ((tm // 2) // 8) * 8)

    vmem_limit = int(min(64 * 1024 * 1024,
                         max(2 * working_set(tm), 32 * 1024 * 1024)))
    return tm, vmem_limit


# -----------------------------------------------------------------------------
# Forward wrapper
# -----------------------------------------------------------------------------
def adapter_forward(hidden_states, wd, bd, wu, bu, *, block_m=512,
                    donate_input=False):
    """Fused Adapter forward: x + up_proj(gelu(down_proj(x))).

    hidden_states: (..., D); wd/bd/wu/bu come from prepare_adapter_params.
    """
    orig_shape = hidden_states.shape
    D = orig_shape[-1]
    A_pad = wd.shape[1]
    M = 1
    for s in orig_shape[:-1]:
        M *= int(s)

    dtype = hidden_states.dtype
    x2 = hidden_states.reshape(M, D)

    x_itemsize = jnp.dtype(dtype).itemsize
    w_itemsize = jnp.dtype(wd.dtype).itemsize
    tm, vmem_limit = _select_row_tile(M, D, A_pad, x_itemsize, w_itemsize,
                                      block_m)

    # Ragged tail handled by Pallas (clipped read, masked write) — no host-side
    # jnp.pad of x or slicing of the output.
    grid = (pl.cdiv(M, tm),)

    pm = _weights_pipeline_mode()
    if pm is not None:
        def resident(shape):
            return pl.BlockSpec(shape, lambda i: (0, 0), pipeline_mode=pm)
    else:
        def resident(shape):
            return pl.BlockSpec(shape, lambda i: (0, 0))

    cost = pl.CostEstimate(
        flops=4 * M * D * A_pad,                    # two matmuls
        transcendentals=M * A_pad,                  # erf in GELU
        bytes_accessed=2 * M * D * x_itemsize
        + 2 * A_pad * D * w_itemsize + (A_pad + D) * 4,
    )

    out = pl.pallas_call(
        _adapter_kernel,
        out_shape=jax.ShapeDtypeStruct((M, D), dtype),
        grid_spec=pltpu.PrefetchScalarGridSpec(
            num_scalar_prefetch=0,
            grid=grid,
            in_specs=[
                pl.BlockSpec((tm, D), lambda i: (i, 0)),   # x rows (pipelined)
                resident((D, A_pad)),                      # VMEM-resident weights
                resident((1, A_pad)),
                resident((A_pad, D)),
                resident((1, D)),
            ],
            out_specs=pl.BlockSpec((tm, D), lambda i: (i, 0)),
        ),
        compiler_params=pltpu.CompilerParams(
            dimension_semantics=("parallel",),
            vmem_limit_bytes=vmem_limit),
        cost_estimate=cost,
        input_output_aliases={0: 0} if donate_input else {},
    )(x2, wd, bd, wu, bu)

    return out.reshape(orig_shape)


# -----------------------------------------------------------------------------
# Demo / correctness check
# -----------------------------------------------------------------------------
if __name__ == "__main__":
    def _reference(x, w_down, b_down, w_up, b_up):
        down = x @ w_down.T + b_down
        act = jax.nn.gelu(down, approximate=False)
        return x + (act @ w_up.T + b_up)

    D = 32   # hidden_size (dim)
    A = 32   # adapter_size

    key = jax.random.PRNGKey(0)
    kx, k1, k2, k3, k4 = jax.random.split(key, 5)
    w_down = jax.random.normal(k1, (A, D), dtype=jnp.float32) * 0.02
    b_down = jax.random.normal(k2, (A,), dtype=jnp.float32) * 0.02
    w_up = jax.random.normal(k3, (D, A), dtype=jnp.float32) * 0.02
    b_up = jax.random.normal(k4, (D,), dtype=jnp.float32) * 0.02

    # One-time parameter re-layout (hoisted out of the per-call path).
    params = prepare_adapter_params(w_down, b_down, w_up, b_up)

    # Main example: (batch=2, seq=8, hidden=32), consistent with the module.
    x = jax.random.normal(kx, (2, 8, D), dtype=jnp.float32)
    out = jax.block_until_ready(adapter_forward(x, *params))
    ref = _reference(x, w_down, b_down, w_up, b_up)
    assert out.shape == x.shape
    assert jnp.allclose(out, ref, atol=1e-5, rtol=1e-5), \
        float(jnp.max(jnp.abs(out - ref)))

    # Ragged-tail check: M not a multiple of the row tile (exercises the
    # clipped/masked last block instead of host-side padding).
    x2 = jax.random.normal(kx, (3, 5, D), dtype=jnp.float32)
    out2 = jax.block_until_ready(adapter_forward(x2, *params))
    ref2 = _reference(x2, w_down, b_down, w_up, b_up)
    assert jnp.allclose(out2, ref2, atol=1e-5, rtol=1e-5), \
        float(jnp.max(jnp.abs(out2 - ref2)))

    # Multi-block grid + ragged tail with a small forced tile.
    x3 = jax.random.normal(kx, (2, 130, D), dtype=jnp.float32)
    out3 = jax.block_until_ready(adapter_forward(x3, *params, block_m=128))
    ref3 = _reference(x3, w_down, b_down, w_up, b_up)
    assert jnp.allclose(out3, ref3, atol=1e-5, rtol=1e-5), \
        float(jnp.max(jnp.abs(out3 - ref3)))

    print("KERNEL_OK")
</pallas_src>

<mosaic_0001>
module attributes {stable_mosaic.version = 11 : i64} {
  func.func @_copy(%arg0: i32, %arg1: memref<8x128xf32, #tpu.memory_space<vmem>>, %arg2: memref<8x128xf32, #tpu.memory_space<vmem>>) attributes {dimension_semantics = [#tpu.dimension_semantics<arbitrary>], iteration_bounds = array<i64: 1>, scalar_prefetch = 0 : i64, scratch_operands = 0 : i64, tpu.core_type = #tpu.core_type<tc>, window_params = [{pipeline_mode = #tpu.pipeline_mode<synchronous>, transform_indices = @transform_0, window_bounds = array<i64: 8, 128>}, {pipeline_mode = #tpu.pipeline_mode<synchronous>, transform_indices = @transform_1, window_bounds = array<i64: 8, 128>}]} {
    %c0 = arith.constant 0 : index
    %c0_0 = arith.constant 0 : index
    %0 = vector.load %arg1[%c0, %c0_0] : memref<8x128xf32, #tpu.memory_space<vmem>>, vector<8x128xf32>
    %c0_1 = arith.constant 0 : index
    %c0_2 = arith.constant 0 : index
    %1 = vector.load %arg2[%c0_1, %c0_2] : memref<8x128xf32, #tpu.memory_space<vmem>>, vector<8x128xf32>
    tpu.vector_store %arg2[%c0_1, %c0_2], %0 {strides = array<i32>} : memref<8x128xf32, #tpu.memory_space<vmem>>, vector<8x128xf32>,
    return
  }
  func.func @transform_0(%arg0: i32) -> (i32, i32) {
    %c0_i32 = arith.constant 0 : i32
    %c0_i32_0 = arith.constant 0 : i32
    %c0_i32_1 = arith.constant 0 : i32
    return %c0_i32, %c0_i32_0 : i32, i32
  }
  func.func @transform_1(%arg0: i32) -> (i32, i32) {
    %c0_i32 = arith.constant 0 : i32
    %c0_i32_0 = arith.constant 0 : i32
    %c0_i32_1 = arith.constant 0 : i32
    return %c0_i32, %c0_i32_0 : i32, i32
  }
}

module attributes {stable_mosaic.version = 11 : i64} {
  func.func @_adapter_kernel(%arg0: i32, %arg1: memref<16x32xf32, #tpu.memory_space<vmem>>, %arg2: memref<32x128xf32, #tpu.memory_space<vmem>>, %arg3: memref<1x128xf32, #tpu.memory_space<vmem>>, %arg4: memref<128x32xf32, #tpu.memory_space<vmem>>, %arg5: memref<1x32xf32, #tpu.memory_space<vmem>>, %arg6: memref<16x32xf32, #tpu.memory_space<vmem>>) attributes {dimension_semantics = [#tpu.dimension_semantics<parallel>], iteration_bounds = array<i64: 1>, scalar_prefetch = 0 : i64, scratch_operands = 0 : i64, tpu.core_type = #tpu.core_type<tc>, window_params = [{transform_indices = @transform_0, window_bounds = array<i64: 16, 32>}, {pipeline_mode = #tpu.pipeline_mode<synchronous>, transform_indices = @transform_1, window_bounds = array<i64: 32, 128>}, {pipeline_mode = #tpu.pipeline_mode<synchronous>, transform_indices = @transform_2, window_bounds = array<i64: 1, 128>}, {pipeline_mode = #tpu.pipeline_mode<synchronous>, transform_indices = @transform_3, window_bounds = array<i64: 128, 32>}, {pipeline_mode = #tpu.pipeline_mode<synchronous>, transform_indices = @transform_4, window_bounds = array<i64: 1, 32>}, {transform_indices = @transform_5, window_bounds = array<i64: 16, 32>}]} {
    %c0 = arith.constant 0 : index
    %c0_0 = arith.constant 0 : index
    %0 = vector.load %arg1[%c0, %c0_0] : memref<16x32xf32, #tpu.memory_space<vmem>>, vector<16x32xf32>
    %c0_1 = arith.constant 0 : index
    %c0_2 = arith.constant 0 : index
    %1 = vector.load %arg2[%c0_1, %c0_2] : memref<32x128xf32, #tpu.memory_space<vmem>>, vector<32x128xf32>
    %cst = arith.constant dense<0.000000e+00> : vector<16x128xf32>
    %2 = tpu.matmul %0, %1, %cst {dimension_numbers = #tpu.dot_dimension_numbers<[1], [0], [0], [1], [0, 0, 1, 1], [], []>} : vector<16x32xf32>, vector<32x128xf32>, vector<16x128xf32> -> vector<16x128xf32>
    %c0_3 = arith.constant 0 : index
    %c0_4 = arith.constant 0 : index
    %3 = vector.load %arg3[%c0_3, %c0_4] : memref<1x128xf32, #tpu.memory_space<vmem>>, vector<1x128xf32>
    %4 = vector.broadcast %3 : vector<1x128xf32> to vector<16x128xf32>
    %5 = arith.addf %2, %4 : vector<16x128xf32>
    %cst_5 = arith.constant 5.000000e-01 : f32
    %6 = vector.broadcast %cst_5 : f32 to vector<16x128xf32>
    %7 = arith.mulf %6, %5 : vector<16x128xf32>
    %cst_6 = arith.constant 0.707106769 : f32
    %8 = vector.broadcast %cst_6 : f32 to vector<16x128xf32>
    %9 = arith.mulf %5, %8 : vector<16x128xf32>
    %10 = math.erf %9 : vector<16x128xf32>
    %cst_7 = arith.constant 1.000000e+00 : f32
    %11 = vector.broadcast %cst_7 : f32 to vector<16x128xf32>
    %12 = arith.addf %11, %10 : vector<16x128xf32>
    %13 = arith.mulf %7, %12 : vector<16x128xf32>
    %c0_8 = arith.constant 0 : index
    %c0_9 = arith.constant 0 : index
    %14 = vector.load %arg4[%c0_8, %c0_9] : memref<128x32xf32, #tpu.memory_space<vmem>>, vector<128x32xf32>
    %cst_10 = arith.constant dense<0.000000e+00> : vector<16x32xf32>
    %15 = tpu.matmul %13, %14, %cst_10 {dimension_numbers = #tpu.dot_dimension_numbers<[1], [0], [0], [1], [0, 0, 1, 1], [], []>} : vector<16x128xf32>, vector<128x32xf32>, vector<16x32xf32> -> vector<16x32xf32>
    %c0_11 = arith.constant 0 : index
    %c0_12 = arith.constant 0 : index
    %16 = vector.load %arg5[%c0_11, %c0_12] : memref<1x32xf32, #tpu.memory_space<vmem>>, vector<1x32xf32>
    %17 = vector.broadcast %16 : vector<1x32xf32> to vector<16x32xf32>
    %18 = arith.addf %15, %17 : vector<16x32xf32>
    %c0_13 = arith.constant 0 : index
    %c0_14 = arith.constant 0 : index
    %19 = vector.load %arg1[%c0_13, %c0_14] : memref<16x32xf32, #tpu.memory_space<vmem>>, vector<16x32xf32>
    %20 = arith.addf %18, %19 : vector<16x32xf32>
    %c0_15 = arith.constant 0 : index
    %c0_16 = arith.constant 0 : index
    %21 = vector.load %arg6[%c0_15, %c0_16] : memref<16x32xf32, #tpu.memory_space<vmem>>, vector<16x32xf32>
    tpu.vector_store %arg6[%c0_15, %c0_16], %20 {strides = array<i32>} : memref<16x32xf32, #tpu.memory_space<vmem>>, vector<16x32xf32>,
    return
  }
  func.func @transform_0(%arg0: i32) -> (i32, i32) {
    %c0_i32 = arith.constant 0 : i32
    %c0_i32_0 = arith.constant 0 : i32
    return %arg0, %c0_i32 : i32, i32
  }
  func.func @transform_1(%arg0: i32) -> (i32, i32) {
    %c0_i32 = arith.constant 0 : i32
    %c0_i32_0 = arith.constant 0 : i32
    %c0_i32_1 = arith.constant 0 : i32
    return %c0_i32, %c0_i32_0 : i32, i32
  }
  func.func @transform_2(%arg0: i32) -> (i32, i32) {
    %c0_i32 = arith.constant 0 : i32
    %c0_i32_0 = arith.constant 0 : i32
    %c0_i32_1 = arith.constant 0 : i32
    return %c0_i32, %c0_i32_0 : i32, i32
  }
  func.func @transform_3(%arg0: i32) -> (i32, i32) {
    %c0_i32 = arith.constant 0 : i32
    %c0_i32_0 = arith.constant 0 : i32
    %c0_i32_1 = arith.constant 0 : i32
    return %c0_i32, %c0_i32_0 : i32, i32
  }
  func.func @transform_4(%arg0: i32) -> (i32, i32) {
    %c0_i32 = arith.constant 0 : i32
    %c0_i32_0 = arith.constant 0 : i32
    %c0_i32_1 = arith.constant 0 : i32
    return %c0_i32, %c0_i32_0 : i32, i32
  }
  func.func @transform_5(%arg0: i32) -> (i32, i32) {
    %c0_i32 = arith.constant 0 : i32
    %c0_i32_0 = arith.constant 0 : i32
    return %arg0, %c0_i32 : i32, i32
  }
}

</mosaic_0001>

<bundles_post_ra>
// kernel: tpu_custom_call.1
= control target key start
LH: loop header
LB: loop body
LE: loop exit
PB: predicated region body
PF: predicated region fallthrough
CT: control target
= control target key end

     0   :  { %6 = vsyncpa [#allocation3], 0  ;;  %s114_s0 = inlined_call_operand.hbm [shape: f32[8,128], index: 0, kind: input, shape index: {}]   ;;  %s115_s1 = inlined_call_operand.hbm [shape: f32[8,128], index: 1, kind: output, shape index: {}]  }
   0x1   :  { %7 = vsyncpa [#allocation4], 0  ;;  %s13_s8 = sshll.u32 %s114_s0, 4  ;;  %s96_s9 = smov [#allocation2]   ;;  %s14_s8 = int_to_ptr.hbm [resolvable:$true] %s13_s8 }
   0x2   :  { %s15_s10 = sshll.u32 %s96_s9, 4  ;;  %s16_s10 = int_to_ptr.vmem [resolvable:$true] %s15_s10 }
   0x3   :  { %18 = dma.hbm_to_vmem [thread:$0]  %s14_s8, 128, %s16_s10, [#allocation3]  }
   0x4   :  { %92 = dma.done.wait [#allocation3], 128  }
   0x5   :  { %93 = vsyncadd [#allocation3], 4294967168  ;;  %s97_s11 = smov [#allocation5]   ;;  %s32_s15 = sshll.u32 %s115_s1, 4  ;;  %v23_v0 = vld [vmem:[#allocation2] sm:$0xff]  ;;  %s33_s15 = int_to_ptr.hbm [resolvable:$true] %s32_s15 }
   0x6   :  { %s30_s12 = sshll.u32 %s97_s11, 4  ;;  %24 = vst [vmem:[#allocation5] sm:$0xff] %v23_v0  ;;  %s31_s12 = int_to_ptr.vmem [resolvable:$true] %s30_s12 }
   0x7   :  { %35 = dma.vmem_to_hbm [thread:$0]  %s31_s12, 128, %s33_s15, [#allocation4]  }
   0x8   :  { %94 = dma.done.wait [#allocation4], 128  }
   0x9   :  { %95 = vsyncadd [#allocation4], 4294967168 }
   0xa   :  { %40 = vsyncpa [#allocation3], 1 }
   0xb   :  { %41 = vsyncpa [#allocation4], 1 }

// kernel: tpu_custom_call.1
= control target key start
LH: loop header
LB: loop body
LE: loop exit
PB: predicated region body
PF: predicated region fallthrough
CT: control target
= control target key end

     0   :  { %s419_s0 = inlined_call_operand.vmem [shape: f32[16,32], index: 0, kind: input, shape index: {}]   ;;  %s420_s1 = inlined_call_operand.vmem [shape: f32[32,128], index: 1, kind: input, shape index: {}]   ;;  %s421_s2 = inlined_call_operand.vmem [shape: f32[1,128], index: 2, kind: input, shape index: {}]   ;;  %s422_s3 = inlined_call_operand.vmem [shape: f32[128,32], index: 3, kind: input, shape index: {}]   ;;  %s423_s4 = inlined_call_operand.vmem [shape: f32[1,32], index: 4, kind: input, shape index: {}]   ;;  %s424_s5 = inlined_call_operand.hbm [shape: f32[16,32], index: 5, kind: output, shape index: {}]  }
   0x1   :  { %v26_v0 = vld [vmem:[%s420_s1 + $0x18] sm:$0xff]  ;;  %v25_v1 = vld [vmem:[%s420_s1 + $0x10] sm:$0xff]  ;;  %v24_v2 = vld [vmem:[%s420_s1 + $0x8] sm:$0xff] }
   0x2   :  { %50 = vmatpush.msra.mxu0 %v26_v0 }
   0x4   :  { %51 = vmatpush.msra.mxu0 %v25_v1 }
   0x5   :  { %10 = vsyncpa [#allocation3], 0  ;;  %v23_v3 = vld [vmem:[%s420_s1] sm:$0xff]  ;;  %vm31_vm0 = vcmask 261120   ;;  %v324_v5 = vld [vmem:[%s419_s0 + $0x8] sm:$0xff]  ;;  %s269_s10 = smov [#allocation2]  }
   0x6   :  { %52 = vmatpush.msra.mxu0 %v24_v2  ;;  %v317_v4 = vld [vmem:[%s419_s0] sm:$0xff]  ;;  %v164_v6 = vld [vmem:[%s422_s3 + $0x78] sm:$0xff]  ;;  %v163_v7 = vld [vmem:[%s422_s3 + $0x70] sm:$0xff]  ;;  %s200_s11 = sshll.u32 %s269_s10, 4  ;;  %s202_s14 = sshll.u32 %s424_s5, 4  ;;  %s201_s11 = int_to_ptr.vmem [resolvable:$true] %s200_s11  ;;  %s203_s14 = int_to_ptr.hbm [resolvable:$true] %s202_s14 }
   0x7   :  { %169 = vmatpush.msra.mxu1 %v164_v6  ;;  %218 = vmatpush.msra.mxu2 %v164_v6  ;;  %v162_v8 = vld [vmem:[%s422_s3 + $0x68] sm:$0xff]  ;;  %v161_v9 = vld [vmem:[%s422_s3 + $0x60] sm:$0xff]  ;;  %v160_v11 = vld [vmem:[%s422_s3 + $0x58] sm:$0xff]  ;;  %s271_s15 = smov 8  }
   0x8   :  { %53 = vmatpush.msra.mxu0 %v23_v3  ;;  %v237_v10 = vld [vmem:[%s421_s2] ss:$0 sm:$0xff]  ;;  %v159_v13 = vld [vmem:[%s422_s3 + $0x50] sm:$0xff]  ;;  %v158_v15 = vld [vmem:[%s422_s3 + $0x48] sm:$0xff] }
   0x9   :  { %214 = vmatmul.msk.f32.vlgmr.msra.gmra.mxu0 %vm31_vm0, %v317_v4  ;;  %170 = vmatpush.msra.mxu1 %v163_v7  ;;  %v157_v17 = vld [vmem:[%s422_s3 + $0x40] sm:$0xff]  ;;  %v156_v19 = vld [vmem:[%s422_s3 + $0x38] sm:$0xff]  ;;  %v155_v20 = vld [vmem:[%s422_s3 + $0x30] sm:$0xff] }
   0xa   :  { %219 = vmatpush.msra.mxu2 %v163_v7  ;;  %v154_v23 = vld [vmem:[%s422_s3 + $0x28] sm:$0xff]  ;;  %v153_v27 = vld [vmem:[%s422_s3 + $0x20] sm:$0xff]  ;;  %v152_v30 = vld [vmem:[%s422_s3 + $0x18] sm:$0xff] }
   0xb   :  { %171 = vmatpush.msra.mxu1 %v162_v8  ;;  %v151_v34 = vld [vmem:[%s422_s3 + $0x10] sm:$0xff]  ;;  %v150_v37 = vld [vmem:[%s422_s3 + $0x8] sm:$0xff]  ;;  %v149_v42 = vld [vmem:[%s422_s3] sm:$0xff] }
   0xc   :  { %220 = vmatpush.msra.mxu2 %v162_v8 }
   0xd   :  { %172 = vmatpush.msra.mxu1 %v161_v9 }
   0xe   :  { %221 = vmatpush.msra.mxu2 %v161_v9 }
   0xf   :  { %173 = vmatpush.msra.mxu1 %v160_v11 }
  0x10   :  { %222 = vmatpush.msra.mxu2 %v160_v11 }
  0x11   :  { %215 = vmatmul.msk.f32.gmra.mxu0 %vm31_vm0, %v324_v5  ;;  %174 = vmatpush.msra.mxu1 %v159_v13 }
  0x12   :  { %223 = vmatpush.msra.mxu2 %v159_v13 }
  0x13   :  { %175 = vmatpush.msra.mxu1 %v158_v15 }
  0x14   :  { %224 = vmatpush.msra.mxu2 %v158_v15 }
  0x15   :  { %176 = vmatpush.msra.mxu1 %v157_v17 }
  0x16   :  { %225 = vmatpush.msra.mxu2 %v157_v17 }
  0x17   :  { %177 = vmatpush.msra.mxu1 %v156_v19 }
  0x18   :  { %226 = vmatpush.msra.mxu2 %v156_v19 }
  0x19   :  { %178 = vmatpush.msra.mxu1 %v155_v20 }
  0x1a   :  { %227 = vmatpush.msra.mxu2 %v155_v20 }
  0x1b   :  { %179 = vmatpush.msra.mxu1 %v154_v23 }
  0x1c   :  { %228 = vmatpush.msra.mxu2 %v154_v23 }
  0x1d   :  { %180 = vmatpush.msra.mxu1 %v153_v27 }
  0x1e   :  { %229 = vmatpush.msra.mxu2 %v153_v27 }
  0x1f   :  { %181 = vmatpush.msra.mxu1 %v152_v30 }
  0x20   :  { %230 = vmatpush.msra.mxu2 %v152_v30 }
  0x21   :  { %182 = vmatpush.msra.mxu1 %v151_v34 }
  0x22   :  { %231 = vmatpush.msra.mxu2 %v151_v34 }
  0x23   :  { %183 = vmatpush.msra.mxu1 %v150_v37 }
  0x24   :  { %232 = vmatpush.msra.mxu2 %v150_v37 }
  0x25   :  { %184 = vmatpush.msra.mxu1 %v149_v42 }
  0x26   :  { %233 = vmatpush.msra.mxu2 %v149_v42 }
  0x86   :  { %v55_v12 = vpop.f32.mrf.mxu0 }
  0x87   :  { %v349_v14 = vadd.f32 %v237_v10, %v55_v12 }
  0x89   :  { %v355_v16 = vmul.f32 0.70710677, %v349_v14 }
  0x8b   :  { %v65_v18 = vmul.f32 %v355_v16, %v355_v16 }
  0x8d   :  { %v368_v21 = vmin.f32 %v65_v18, 16.0 }
  0x8e   :  { %v58_v22 = vpop.f32.mrf.mxu0 }
  0x8f   :  { %v67_v24 = vmul.f32 2.1237322e-06, %v368_v21  ;;  %v374_v25 = vadd.f32 %v237_v10, %v58_v22  ;;  %v78_v26 = vmul.f32 3.8918573e-05, %v368_v21 }
  0x91   :  { %v68_v28 = vadd.f32 0.00028619796, %v67_v24  ;;  %v381_v29 = vmul.f32 0.70710677, %v374_v25  ;;  %v79_v31 = vadd.f32 0.001143296, %v78_v26 }
  0x93   :  { %v69_v32 = vmul.f32 %v68_v28, %v368_v21  ;;  %v105_v33 = vmul.f32 %v381_v29, %v381_v29  ;;  %v80_v35 = vmul.f32 %v79_v31, %v368_v21 }
  0x95   :  { %v106_v36 = vmin.f32 %v105_v33, 16.0  ;;  %v81_v38 = vadd.f32 0.014752088, %v80_v35  ;;  %v70_v39 = vadd.f32 0.0036580483, %v69_v32  ;;  %v61_v35 = vmul.f32 0.5, %v349_v14 }
  0x96   :  { %v238_v14 = vld [vmem:[%s423_s4] ss:$0 sm:$0xff]  ;;  %s270_s4 = smov 128  }
  0x97   :  { %v107_v40 = vmul.f32 2.1237322e-06, %v106_v36  ;;  %v118_v41 = vmul.f32 3.8918573e-05, %v106_v36  ;;  %v82_v43 = vmul.f32 %v81_v38, %v368_v21  ;;  %v71_v47 = vmul.f32 %v70_v39, %v368_v21 }
  0x99   :  { %v108_v44 = vadd.f32 0.00028619796, %v107_v40  ;;  %v119_v45 = vadd.f32 0.001143296, %v118_v41  ;;  %v83_v46 = vadd.f32 0.112945676, %v82_v43 }
  0x9a   :  { %v72_v54 = vadd.f32 0.05243302, %v71_v47  ;;  %v62_v43 = vmul.f32 0.5, %v374_v25 }
  0x9b   :  { %v109_v48 = vmul.f32 %v108_v44, %v106_v36  ;;  %v120_v49 = vmul.f32 %v119_v45, %v106_v36  ;;  %v84_v50 = vmul.f32 %v83_v46, %v368_v21 }
  0x9c   :  { %v73_v60 = vmul.f32 %v72_v54, %v368_v21 }
  0x9d   :  { %v121_v51 = vadd.f32 0.014752088, %v120_v49  ;;  %v110_v52 = vadd.f32 0.0036580483, %v109_v48  ;;  %v85_v53 = vadd.f32 0.4994258, %v84_v50 }
  0x9e   :  { %v74_v0 = vadd.f32 0.18741608, %v73_v60 }
  0x9f   :  { %v122_v55 = vmul.f32 %v121_v51, %v106_v36  ;;  %v86_v56 = vmul.f32 %v85_v53, %v368_v21  ;;  %v111_v58 = vmul.f32 %v110_v52, %v106_v36 }
  0xa0   :  { %v75_v7 = vmul.f32 %v74_v0, %v368_v21 }
  0xa1   :  { %v123_v57 = vadd.f32 0.112945676, %v122_v55  ;;  %v87_v59 = vadd.f32 1.0, %v86_v56  ;;  %v112_v63 = vadd.f32 0.05243302, %v111_v58 }
  0xa2   :  { %v76_v12 = vadd.f32 1.1283791, %v75_v7 }
  0xa3   :  { %v124_v61 = vmul.f32 %v123_v57, %v106_v36  ;;  %239 = vrcp.f32 %v87_v59  ;;  %v113_v6 = vmul.f32 %v112_v63, %v106_v36  ;;  %v99_v11 = vand.u32 2147483648, %v87_v59 }
  0xa4   :  { %v97_v15 = vand.u32 2147483647, %v87_v59  ;;  %vm93_vm2 = vweird.f32 %v87_v59  ;;  %v77_v23 = vmul.f32 %v76_v12, %v355_v16 }
  0xa5   :  { %v125_v62 = vadd.f32 0.4994258, %v124_v61  ;;  %v114_v10 = vadd.f32 0.18741608, %v113_v6  ;;  %v100_v20 = vor.u32 1.1754944e-38, %v99_v11 }
  0xa6   :  { %vm98_vm4 = vcmp.eq.f32.partialorder %v97_v15, 8.507059e+37 }
  0xa7   :  { %v126_v1 = vmul.f32 %v125_v62, %v106_v36  ;;  %v115_v19 = vmul.f32 %v114_v10, %v106_v36 }
  0xa9   :  { %v127_v2 = vadd.f32 1.0, %v126_v1  ;;  %v240_v3 = vpop.eup %239  ;;  %v116_v30 = vadd.f32 1.1283791, %v115_v19 }
  0xaa   :  { %v89_v8 = vmul.f32 %v240_v3, %v87_v59  ;;  %vm94_vm1 = vweird.f32 %v240_v3 }
  0xab   :  { %241 = vrcp.f32 %v127_v2  ;;  %vm95_vm3 = vmor %vm93_vm2, %vm94_vm1  ;;  %v139_v28 = vand.u32 2147483648, %v127_v2  ;;  %v137_v32 = vand.u32 2147483647, %v127_v2  ;;  %vm133_vm6 = vweird.f32 %v127_v2 }
  0xac   :  { %v90_v9 = vsub.f32 1.0, %v89_v8  ;;  %v117_v16 = vmul.f32 %v116_v30, %v381_v29 }
  0xad   :  { %v140_v37 = vor.u32 1.1754944e-38, %v139_v28  ;;  %vm138_vm8 = vcmp.eq.f32.partialorder %v137_v32, 8.507059e+37 }
  0xae   :  { %v91_v13 = vmul.f32 %v240_v3, %v90_v9 }
  0xb0   :  { %v92_v18 = vadd.f32 %v240_v3, %v91_v13 }
  0xb1   :  { %v242_v17 = vpop.eup %241 }
  0xb2   :  { %v129_v22 = vmul.f32 %v242_v17, %v127_v2  ;;  %v96_v24 = vsel %vm95_vm3, %v240_v3, %v92_v18  ;;  %vm134_vm5 = vweird.f32 %v242_v17 }
  0xb3   :  { %v101_v21 = vsel %vm98_vm4, %v100_v20, %v96_v24  ;;  %vm135_vm7 = vmor %vm133_vm6, %vm134_vm5 }
  0xb4   :  { %v130_v26 = vsub.f32 1.0, %v129_v22  ;;  %v102_v27 = vmul.f32 %v101_v21, %v77_v23 }
  0xb6   :  { %v131_v31 = vmul.f32 %v242_v17, %v130_v26  ;;  %v216_v33 = vclamps-f32 %v102_v27, 1.0 }
  0xb8   :  { %v132_v34 = vadd.f32 %v242_v17, %v131_v31  ;;  %v145_v36 = vadd.f32 1.0, %v216_v33 }
  0xba   :  { %v136_v38 = vsel %vm135_vm7, %v242_v17, %v132_v34  ;;  %v147_v39 = vmul.f32 %v145_v36, %v61_v35 }
  0xbb   :  { %v141_v40 = vsel %vm138_vm8, %v140_v37, %v136_v38 }
  0xbc   :  { %v142_v41 = vmul.f32 %v141_v40, %v117_v16  ;;  %185 = vmatmul.f32.vlgmr.msra.gmra.mxu1 %v147_v39 }
  0xbe   :  { %v217_v42 = vclamps-f32 %v142_v41, 1.0 }
  0xc0   :  { %v146_v44 = vadd.f32 1.0, %v217_v42 }
  0xc2   :  { %v148_v45 = vmul.f32 %v146_v44, %v62_v43 }
  0xc4   :  { %188 = vmatmul.f32.vlgmr.msra.gmra.mxu2 %v148_v45 }
 0x139   :  { %v186_v46 = vpop.f32.mrf.mxu1 }
 0x13a   :  { %v187_v47 = vadd.f32 %v238_v14, %v186_v46 }
 0x13c   :  { %v192_v29 = vadd.f32 %v187_v47, %v317_v4 }
 0x13e   :  { %194 = vst.msk [vmem:[#allocation2] sm:$0xff] %vm31_vm0, %v192_v29 }
 0x147   :  { %v189_v25 = vpop.f32.mrf.mxu2 }
 0x148   :  { %v190_v48 = vadd.f32 %v238_v14, %v189_v25 }
 0x14a   :  { %v193_v49 = vadd.f32 %v190_v48, %v324_v5 }
 0x14c   :  { %195 = vst.msk [vmem:[#allocation2 + $0x8] sm:$0xff] %vm31_vm0, %v193_v49 }
 0x14d   :  { %208 = dma.vmem_to_hbm [thread:$0]  %s201_s11, 256, %s203_s14, [#allocation3], %s270_s4, %s270_s4, %s271_s15  }
 0x14e   :  { %267 = dma.done.wait [#allocation3], 256  }
 0x14f   :  { %268 = vsyncadd [#allocation3], 4294967040 }
 0x150   :  { %213 = vsyncpa [#allocation3], 1 }

</bundles_post_ra>
